<compile_context>
chip_gen: v5e
topology: v5e:2x2
jax: 0.10.0
libtpu: 0.0.40
codegen_flags: <defaults>
</compile_context>

<pallas_src>
import functools

import jax
import jax.numpy as jnp
from jax.experimental import pallas as pl
from jax.experimental.pallas import tpu as pltpu


def _round_up(x, m):
    return ((x + m - 1) // m) * m


@functools.lru_cache(maxsize=1)
def _vmem_capacity_bytes():
    """Physical VMEM per TensorCore; falls back to the smallest (v7x: 64 MiB)."""
    try:
        return int(pltpu.get_tpu_info().vmem_capacity_bytes)
    except Exception:
        return 64 << 20


def _pick_tile(dim, cap, align):
    """Pick a tile (multiple of `align`, <= cap) minimising padding of `dim`.

    Returns (tile, padded_dim). If the aligned dim fits under the cap we use a
    single tile (padding only up to layout alignment); otherwise walk a /2
    ladder from the cap and keep the candidate with the least padding
    (larger tiles win ties -> fewer grid steps, fewer operand re-reads).
    """
    dp = _round_up(dim, align)
    if dp <= cap:
        return dp, dp
    best_t, best_pad = None, None
    t = cap
    while t >= align:
        pad = _round_up(dim, t) - dim
        if best_pad is None or pad < best_pad:
            best_t, best_pad = t, pad
        if best_pad == 0:
            break
        t //= 2
    return best_t, _round_up(dim, best_t)


# --------------------------------------------------------------------------
# Kernels
# --------------------------------------------------------------------------
def _linear_kernel_single(x_ref, w_ref, b_ref, o_ref):
    """Whole (padded) K in one block: one MXU dot per output tile + bias."""
    o_ref[...] = (
        jnp.dot(x_ref[...], w_ref[...], preferred_element_type=jnp.float32)
        + b_ref[...]
    ).astype(o_ref.dtype)


def _linear_kernel_ksplit_f32(x_ref, w_ref, b_ref, o_ref):
    """K split over grid axis 2; accumulate directly in the resident f32 o_ref.

    Bias is folded into the k==0 initialisation (no zero store, no final
    read-modify-write pass over the output tile).
    """
    k = pl.program_id(2)
    part = jnp.dot(x_ref[...], w_ref[...], preferred_element_type=jnp.float32)

    @pl.when(k == 0)
    def _():
        o_ref[...] = part + b_ref[...]

    @pl.when(k > 0)
    def _():
        o_ref[...] += part


def _linear_kernel_ksplit_cast(x_ref, w_ref, b_ref, o_ref, acc_ref):
    """K split with a narrow (e.g. bf16) output: accumulate in an f32 VMEM
    scratch, cast + store only on the last k step."""
    k = pl.program_id(2)
    part = jnp.dot(x_ref[...], w_ref[...], preferred_element_type=jnp.float32)

    @pl.when(k == 0)
    def _():
        acc_ref[...] = part + b_ref[...]

    @pl.when(k > 0)
    def _():
        acc_ref[...] += part

    @pl.when(k == pl.num_programs(2) - 1)
    def _():
        o_ref[...] = acc_ref[...].astype(o_ref.dtype)


# --------------------------------------------------------------------------
# Wrapper
# --------------------------------------------------------------------------
@functools.partial(
    jax.jit, static_argnames=("tm", "tn", "tk", "compute_dtype", "out_dtype")
)
def linear_forward(x, weight, bias, *, tm=None, tn=None, tk=None,
                   compute_dtype=jnp.bfloat16, out_dtype=jnp.float32):
    """y = x @ weight + bias via a tiled Pallas TPU kernel.

    x: (B, K)   weight: (K, N)   bias: (N,)   ->   (B, N) in `out_dtype`.
    Default: bf16 operands on the MXU, f32 accumulation, f32 output.
    """
    B, K = x.shape
    K2, N = weight.shape
    assert K == K2, "input_size mismatch"
    assert bias.shape == (N,)

    compute_dtype = jnp.dtype(compute_dtype)
    out_dtype = jnp.dtype(out_dtype)

    if x.dtype != compute_dtype:
        x = x.astype(compute_dtype)
    if weight.dtype != compute_dtype:
        # For repeated calls, pre-cast (and pre-pad) the weight once outside
        # this function to avoid an extra K*N HBM pass per call.
        weight = weight.astype(compute_dtype)
    itemsize = compute_dtype.itemsize
    out_itemsize = out_dtype.itemsize

    # --- generation-aware tile caps -------------------------------------
    vmem_cap = _vmem_capacity_bytes()
    big_vmem = vmem_cap >= (100 << 20)          # v5e / v6e: 128 MiB per core
    cap_m = 512
    cap_n = 2048 if big_vmem else 1024
    cap_k = 4096 if big_vmem else 2048

    # bf16 packs two rows per sublane -> align the batch (second-minor) dim
    # to 16 rows; f32 needs 8; (hypothetical) 8-bit dtypes need 32.
    row_align = {1: 32, 2: 16, 4: 8}.get(itemsize, 8)

    if tm is None:
        tm, Bp = _pick_tile(B, cap_m, row_align)
    else:
        Bp = _round_up(B, tm)
    if tn is None:
        tn, Np = _pick_tile(N, cap_n, 128)
    else:
        Np = _round_up(N, tn)
    if tk is None:
        tk, Kp = _pick_tile(K, cap_k, 128)
    else:
        Kp = _round_up(K, tk)

    nm, nn, nk = Bp // tm, Np // tn, Kp // tk

    # v7x has 2 TensorCores: expose >= 2 parallel output tiles when the whole
    # problem would otherwise be a single (1,1) parallel grid point.
    if nm == 1 and nn == 1 and Np >= 256 and Np % 256 == 0:
        tn = Np // 2
        nn = 2

    # --- padding (zero-padding K is numerically exact; padded rows/cols of
    #     the output are sliced away below) ------------------------------
    if (Bp, Kp) != (B, K):
        x = jnp.pad(x, ((0, Bp - B), (0, Kp - K)))
    if (Kp, Np) != (K, N):
        weight = jnp.pad(weight, ((0, Kp - K), (0, Np - N)))
    bias2d = bias.astype(jnp.float32)
    if Np != N:
        bias2d = jnp.pad(bias2d, (0, Np - N))
    bias2d = bias2d.reshape(1, Np)

    # --- VMEM budget (double-buffered tiles; (1,tn) bias pads to (8,tn)) -
    acc_bytes = 4 * tm * tn if (nk > 1 and out_dtype != jnp.float32) else 0
    vmem_bytes = (
        2 * itemsize * tm * tk            # x tiles
        + 2 * itemsize * tk * tn          # weight tiles
        + 2 * out_itemsize * tm * tn      # output tiles
        + 2 * 4 * 8 * tn                  # bias tiles (padded to 8 sublanes)
        + acc_bytes                       # f32 scratch accumulator (if any)
    )
    vmem_limit = int(min(max(vmem_bytes + (8 << 20), 32 << 20), vmem_cap))

    # --- grid / specs -----------------------------------------------------
    if nk == 1:
        # Choose the parallel-axis order so the LARGER operand's block index
        # is invariant over the inner grid axis (Pallas skips its re-fetch).
        stream_w = Bp * Kp + nm * Kp * Np      # grid (nm, nn): x held, w streamed
        stream_x = nn * Bp * Kp + Kp * Np      # grid (nn, nm): w held, x streamed
        if stream_x < stream_w:
            grid = (nn, nm)
            in_specs = [
                pl.BlockSpec((tm, tk), lambda j, i: (i, 0)),   # x tile
                pl.BlockSpec((tk, tn), lambda j, i: (0, j)),   # weight tile
                pl.BlockSpec((1, tn), lambda j, i: (0, j)),    # bias tile
            ]
            out_specs = pl.BlockSpec((tm, tn), lambda j, i: (i, j))
            x_reads, w_reads = nn, 1
        else:
            grid = (nm, nn)
            in_specs = [
                pl.BlockSpec((tm, tk), lambda i, j: (i, 0)),
                pl.BlockSpec((tk, tn), lambda i, j: (0, j)),
                pl.BlockSpec((1, tn), lambda i, j: (0, j)),
            ]
            out_specs = pl.BlockSpec((tm, tn), lambda i, j: (i, j))
            x_reads, w_reads = 1, nm
        kernel = _linear_kernel_single
        dim_sem = ("parallel", "parallel")
        scratch_shapes = []
    else:
        grid = (nm, nn, nk)                    # reduction axis last
        in_specs = [
            pl.BlockSpec((tm, tk), lambda i, j, k: (i, k)),
            pl.BlockSpec((tk, tn), lambda i, j, k: (k, j)),
            pl.BlockSpec((1, tn), lambda i, j, k: (0, j)),
        ]
        out_specs = pl.BlockSpec((tm, tn), lambda i, j, k: (i, j))
        x_reads, w_reads = nn, nm
        dim_sem = ("parallel", "parallel", "arbitrary")
        if out_dtype == jnp.float32:
            kernel = _linear_kernel_ksplit_f32      # accumulate in o_ref
            scratch_shapes = []
        else:
            kernel = _linear_kernel_ksplit_cast     # f32 scratch, cast at end
            scratch_shapes = [pltpu.VMEM((tm, tn), jnp.float32)]

    cost = pl.CostEstimate(
        flops=2 * B * K * N,
        bytes_accessed=(
            itemsize * (x_reads * Bp * Kp + w_reads * Kp * Np)
            + out_itemsize * Bp * Np
            + 4 * Np
        ),
        transcendentals=0,
    )

    out = pl.pallas_call(
        kernel,
        out_shape=jax.ShapeDtypeStruct((Bp, Np), out_dtype),
        grid_spec=pltpu.PrefetchScalarGridSpec(
            num_scalar_prefetch=0,
            grid=grid,
            in_specs=in_specs,
            out_specs=out_specs,
            scratch_shapes=scratch_shapes,
        ),
        compiler_params=pltpu.CompilerParams(
            dimension_semantics=dim_sem,
            vmem_limit_bytes=vmem_limit,
        ),
        cost_estimate=cost,
    )(x, weight, bias2d)

    if (Bp, Np) != (B, N):
        out = out[:B, :N]
    return out


if __name__ == "__main__":
    key = jax.random.PRNGKey(0)

    # --- Test 1: module-implied small shapes, default bf16 compute path. ---
    batch, input_size, output_size = 8, 32, 16
    kx, kw, kb = jax.random.split(key, 3)
    x = jax.random.normal(kx, (batch, input_size), dtype=jnp.float32)
    weight = jax.random.uniform(kw, (input_size, output_size), dtype=jnp.float32)  # torch.rand
    bias = jax.random.uniform(kb, (output_size,), dtype=jnp.float32)

    y = linear_forward(x, weight, bias)                 # bf16 compute, f32 out
    jax.block_until_ready(y)
    xb = x.astype(jnp.bfloat16).astype(jnp.float32)
    wb = weight.astype(jnp.bfloat16).astype(jnp.float32)
    y_ref_bf = xb @ wb + bias
    assert y.shape == (batch, output_size)
    assert jnp.allclose(y, y_ref_bf, atol=1e-2, rtol=1e-2), "mismatch (test 1, bf16)"

    # --- Test 2: non-aligned shapes, forced K-split, f32 compute (exact
    #     accumulate-into-output path + padding). ---
    b2, k2, n2 = 36, 200, 272
    kx2, kw2, kb2 = jax.random.split(jax.random.PRNGKey(1), 3)
    x2 = jax.random.normal(kx2, (b2, k2), dtype=jnp.float32)
    w2 = jax.random.uniform(kw2, (k2, n2), dtype=jnp.float32)
    bb2 = jax.random.uniform(kb2, (n2,), dtype=jnp.float32)
    y2 = linear_forward(x2, w2, bb2, tk=128, compute_dtype=jnp.float32)
    jax.block_until_ready(y2)
    y2_ref = x2 @ w2 + bb2
    assert y2.shape == (b2, n2)
    assert jnp.allclose(y2, y2_ref, atol=1e-3, rtol=1e-3), "mismatch (test 2, f32)"

    # --- Test 3: K-split with bf16 output (f32 scratch accumulator) and the
    #     tiny-grid megacore split along N. ---
    b3, k3, n3 = 16, 256, 256
    kx3, kw3, kb3 = jax.random.split(jax.random.PRNGKey(2), 3)
    x3 = jax.random.normal(kx3, (b3, k3), dtype=jnp.float32)
    w3 = jax.random.uniform(kw3, (k3, n3), dtype=jnp.float32)
    bb3 = jax.random.uniform(kb3, (n3,), dtype=jnp.float32)
    y3 = linear_forward(x3, w3, bb3, tk=128, compute_dtype=jnp.float32,
                        out_dtype=jnp.bfloat16)
    jax.block_until_ready(y3)
    y3_ref = x3 @ w3 + bb3
    assert y3.shape == (b3, n3) and y3.dtype == jnp.bfloat16
    assert jnp.allclose(y3.astype(jnp.float32), y3_ref, atol=2e-2, rtol=2e-2), \
        "mismatch (test 3, bf16 out)"

    # --- Test 4: nk==1 with nm>1 — exercises the weight-invariant grid order
    #     (weight fetched once, x streamed). ---
    b4, k4, n4 = 32, 64, 128
    kx4, kw4, kb4 = jax.random.split(jax.random.PRNGKey(3), 3)
    x4 = jax.random.normal(kx4, (b4, k4), dtype=jnp.float32)
    w4 = jax.random.uniform(kw4, (k4, n4), dtype=jnp.float32)
    bb4 = jax.random.uniform(kb4, (n4,), dtype=jnp.float32)
    y4 = linear_forward(x4, w4, bb4, tm=8, compute_dtype=jnp.float32)
    jax.block_until_ready(y4)
    y4_ref = x4 @ w4 + bb4
    assert jnp.allclose(y4, y4_ref, atol=1e-3, rtol=1e-3), "mismatch (test 4)"

    # TODO(synk): backward/update/zero_grad of the module are training-state
    # bookkeeping (not part of the forward pass) and are intentionally omitted.
    print("KERNEL_OK")
</pallas_src>

<mosaic_0001>
module attributes {stable_mosaic.version = 11 : i64} {
  func.func @_linear_kernel_single(%arg0: i32, %arg1: i32, %arg2: memref<16x128xbf16, #tpu.memory_space<vmem>>, %arg3: memref<128x128xbf16, #tpu.memory_space<vmem>>, %arg4: memref<1x128xf32, #tpu.memory_space<vmem>>, %arg5: memref<16x128xf32, #tpu.memory_space<vmem>>) attributes {dimension_semantics = [#tpu.dimension_semantics<parallel>, #tpu.dimension_semantics<parallel>], iteration_bounds = array<i64: 1, 1>, scalar_prefetch = 0 : i64, scratch_operands = 0 : i64, tpu.core_type = #tpu.core_type<tc>, window_params = [{transform_indices = @transform_0, window_bounds = array<i64: 16, 128>}, {transform_indices = @transform_1, window_bounds = array<i64: 128, 128>}, {transform_indices = @transform_2, window_bounds = array<i64: 1, 128>}, {transform_indices = @transform_3, window_bounds = array<i64: 16, 128>}]} {
    %c0 = arith.constant 0 : index
    %c0_0 = arith.constant 0 : index
    %0 = vector.load %arg2[%c0, %c0_0] : memref<16x128xbf16, #tpu.memory_space<vmem>>, vector<16x128xbf16>
    %c0_1 = arith.constant 0 : index
    %c0_2 = arith.constant 0 : index
    %1 = vector.load %arg3[%c0_1, %c0_2] : memref<128x128xbf16, #tpu.memory_space<vmem>>, vector<128x128xbf16>
    %cst = arith.constant dense<0.000000e+00> : vector<16x128xf32>
    %2 = tpu.matmul %0, %1, %cst {dimension_numbers = #tpu.dot_dimension_numbers<[1], [0], [0], [1], [0, 0, 1, 1], [], []>} : vector<16x128xbf16>, vector<128x128xbf16>, vector<16x128xf32> -> vector<16x128xf32>
    %c0_3 = arith.constant 0 : index
    %c0_4 = arith.constant 0 : index
    %3 = vector.load %arg4[%c0_3, %c0_4] : memref<1x128xf32, #tpu.memory_space<vmem>>, vector<1x128xf32>
    %4 = vector.broadcast %3 : vector<1x128xf32> to vector<16x128xf32>
    %5 = arith.addf %2, %4 : vector<16x128xf32>
    %c0_5 = arith.constant 0 : index
    %c0_6 = arith.constant 0 : index
    %6 = vector.load %arg5[%c0_5, %c0_6] : memref<16x128xf32, #tpu.memory_space<vmem>>, vector<16x128xf32>
    tpu.vector_store %arg5[%c0_5, %c0_6], %5 {strides = array<i32>} : memref<16x128xf32, #tpu.memory_space<vmem>>, vector<16x128xf32>,
    return
  }
  func.func @transform_0(%arg0: i32, %arg1: i32) -> (i32, i32) {
    %c0_i32 = arith.constant 0 : i32
    %c0_i32_0 = arith.constant 0 : i32
    return %arg0, %c0_i32 : i32, i32
  }
  func.func @transform_1(%arg0: i32, %arg1: i32) -> (i32, i32) {
    %c0_i32 = arith.constant 0 : i32
    %c0_i32_0 = arith.constant 0 : i32
    return %c0_i32, %arg1 : i32, i32
  }
  func.func @transform_2(%arg0: i32, %arg1: i32) -> (i32, i32) {
    %c0_i32 = arith.constant 0 : i32
    %c0_i32_0 = arith.constant 0 : i32
    return %c0_i32, %arg1 : i32, i32
  }
  func.func @transform_3(%arg0: i32, %arg1: i32) -> (i32, i32) {
    %c0_i32 = arith.constant 0 : i32
    return %arg0, %arg1 : i32, i32
  }
}

</mosaic_0001>

<bundles_post_ra>
// kernel: linear_forward.1
= control target key start
LH: loop header
LB: loop body
LE: loop exit
PB: predicated region body
PF: predicated region fallthrough
CT: control target
= control target key end

     0   :  { %s212_s1 = inlined_call_operand.vmem [shape: bf16[128,128], index: 1, kind: input, shape index: {}]   ;;  %s213_s2 = inlined_call_operand.vmem [shape: f32[1,128], index: 2, kind: input, shape index: {}]   ;;  %s214_s0 = inlined_call_operand.vmem [shape: bf16[16,128], index: 0, kind: input, shape index: {}]   ;;  %s215_s3 = inlined_call_operand.vmem [shape: f32[16,128], index: 3, kind: output, shape index: {}]  }
   0x1   :  { %v154_v0 = vld [vmem:[%s212_s1 + $0x38] sm:$0xff]  ;;  %v153_v1 = vld [vmem:[%s212_s1 + $0x30] sm:$0xff]  ;;  %v152_v2 = vld [vmem:[%s212_s1 + $0x28] sm:$0xff] }
   0x2   :  { %90 = vmatpush.bf16.msra.mxu0 %v154_v0  ;;  %v151_v3 = vld [vmem:[%s212_s1 + $0x20] sm:$0xff]  ;;  %v150_v4 = vld [vmem:[%s212_s1 + $0x18] sm:$0xff]  ;;  %v149_v5 = vld [vmem:[%s212_s1 + $0x10] sm:$0xff] }
   0x3   :  { %v148_v6 = vld [vmem:[%s212_s1 + $0x8] sm:$0xff]  ;;  %v147_v7 = vld [vmem:[%s212_s1] sm:$0xff] }
   0x4   :  { %v146_v8 = vld [vmem:[%s214_s0] sm:$0xff] }
   0x5   :  { %v155_v9 = vld [vmem:[%s213_s2] ss:$0 sm:$0xff] }
   0x6   :  { %91 = vmatpush.bf16.msra.mxu0 %v153_v1 }
   0xa   :  { %92 = vmatpush.bf16.msra.mxu0 %v152_v2 }
   0xe   :  { %93 = vmatpush.bf16.msra.mxu0 %v151_v3 }
  0x12   :  { %94 = vmatpush.bf16.msra.mxu0 %v150_v4 }
  0x16   :  { %95 = vmatpush.bf16.msra.mxu0 %v149_v5 }
  0x1a   :  { %96 = vmatpush.bf16.msra.mxu0 %v148_v6 }
  0x1e   :  { %97 = vmatpush.bf16.msra.mxu0 %v147_v7 }
  0x21   :  { %98 = vmatmul.bf16.vlgmr.msra.gmra.mxu0 %v146_v8 }
  0x9e   :  { %v99_v10 = vpop.f32.mrf.mxu0 }
  0x9f   :  { %v100_v11 = vadd.f32 %v155_v9, %v99_v10 }
  0xa1   :  { %104 = vst [vmem:[%s215_s3] sm:$0xff] %v100_v11 }
  0xa6   :  { %v101_v12 = vpop.f32.mrf.mxu0 }
  0xa7   :  { %v102_v13 = vadd.f32 %v155_v9, %v101_v12 }
  0xa9   :  { %105 = vst [vmem:[%s215_s3 + $0x8] sm:$0xff] %v102_v13 }

</bundles_post_ra>
